<compile_context>
chip_gen: v6e
topology: v6e:2x2x1
jax: 0.10.0
libtpu: 0.0.40
codegen_flags: <defaults>
</compile_context>

<pallas_src>
import numpy as np
import jax
import jax.numpy as jnp
from jax.experimental import pallas as pl
from jax.experimental.pallas import tpu as pltpu

LANE = 128          # lane padding for every feature dimension


def _vmem_limit_bytes():
    """Generation-aware scoped-VMEM limit (~48 MiB on v7x, ~96 MiB on v5e/v6e)."""
    try:
        cap = int(getattr(pltpu.get_tpu_info(), "vmem_capacity_bytes", 0) or 0)
        if cap > 0:
            return max(32 * 1024 * 1024, min((cap * 3) // 4, 96 * 1024 * 1024))
    except Exception:
        pass
    return 32 * 1024 * 1024


VMEM_LIMIT = _vmem_limit_bytes()


def _next_pow2(v):
    v = int(v)
    return 1 if v <= 1 else 1 << (v - 1).bit_length()


def _pad2(w, rows, cols):
    out = np.zeros((rows, cols), np.float32)
    w = np.asarray(w, np.float32)
    out[:w.shape[0], :w.shape[1]] = w
    return out


# ----------------------------------------------------------------------------
# Pallas kernels
# ----------------------------------------------------------------------------
def _mlp2_kernel(x_ref, w1_ref, b1_ref, w2_ref, b2_ref, o_ref):
    """Fused 2-layer MLP: o = relu(x @ w1 + b1) @ w2 + b2 (bf16 MXU operands, f32 accumulate)."""
    h = jnp.dot(x_ref[...], w1_ref[...], preferred_element_type=jnp.float32) + b1_ref[...]
    h = jnp.maximum(h, 0.0).astype(jnp.bfloat16)
    o_ref[...] = jnp.dot(h, w2_ref[...], preferred_element_type=jnp.float32) + b2_ref[...]


def pallas_mlp2(feats, w1, b1, w2, b2):
    """Point-wise CNN stand-in, tiled over points (rows); bf16 activations on the wire."""
    feats = np.asarray(feats, np.float32)
    n, f = feats.shape
    n_pad = max(_next_pow2(n), 128)        # bucketed pad sizes -> few distinct compiles
    tile = min(n_pad, 1024)                # large row tiles amortize per-step overhead
    x_p = np.zeros((n_pad, LANE), dtype=jnp.bfloat16)   # host-side pad, bf16 H2D bytes
    x_p[:n, :f] = feats
    out = pl.pallas_call(
        _mlp2_kernel,
        out_shape=jax.ShapeDtypeStruct((n_pad, LANE), jnp.float32),
        grid=(n_pad // tile,),
        in_specs=[
            pl.BlockSpec((tile, LANE), lambda i: (i, 0)),
            pl.BlockSpec((LANE, LANE), lambda i: (0, 0)),
            pl.BlockSpec((1, LANE), lambda i: (0, 0)),
            pl.BlockSpec((LANE, LANE), lambda i: (0, 0)),
            pl.BlockSpec((1, LANE), lambda i: (0, 0)),
        ],
        out_specs=pl.BlockSpec((tile, LANE), lambda i: (i, 0)),
        compiler_params=pltpu.CompilerParams(
            dimension_semantics=("parallel",),
            vmem_limit_bytes=VMEM_LIMIT),
    )(jnp.asarray(x_p), w1, b1, w2, b2)
    return out[:n]


def _gnn_kernel(x_ref, e_ref, src_ref, dst_ref,
                w1_ref, b1_ref, wm_ref, bm_ref, w2_ref, b2_ref,
                wnp_ref, bnp_ref, wep_ref, bep_ref,
                npred_ref, epred_ref,
                hb_scr, agg_scr, h2b_scr):
    """One fused NNConv-style GNN stage, tiled over edges with a 2-phase grid.

    grid = (phase, edge_tile):
      phase 0: node layer-1 (tile 0 only), per-tile message pass + scatter-add into a VMEM
               f32 accumulator, node update + node head at the last tile.
      phase 1: per-tile edge prediction head from the updated node features (kept in VMEM).
    Gather AND scatter reuse the same node-major one-hot (n_pad x tile_e) built directly in
    bf16 from lane-dense int32 edge-index row vectors; padded edges carry index -1 so they
    never match a node row.  All intermediates live in VMEM; heads are stored as bf16.
    """
    f32, bf16 = jnp.float32, jnp.bfloat16
    phase = pl.program_id(0)
    tile = pl.program_id(1)
    n_tiles = pl.num_programs(1)
    n_pad = x_ref.shape[0]
    tile_e = e_ref.shape[0]
    dn_t = (((0,), (0,)), ((), ()))   # contract over the node axis (one-hot gathers)

    # node-major one-hots for this edge tile, built directly in bf16 (no f32 temporaries)
    row_iota = jax.lax.broadcasted_iota(jnp.int32, (n_pad, tile_e), 0)
    g_src = (row_iota == src_ref[...]).astype(bf16)
    g_dst = (row_iota == dst_ref[...]).astype(bf16)
    eb = e_ref[...]

    @pl.when((phase == 0) & (tile == 0))
    def _():
        h = jnp.dot(x_ref[...], w1_ref[...], preferred_element_type=f32) + b1_ref[...]
        hb_scr[...] = jnp.maximum(h, 0.0).astype(bf16)
        agg_scr[...] = jnp.zeros_like(agg_scr)

    @pl.when(phase == 0)
    def _():
        hb = hb_scr[...]
        h_src = jax.lax.dot_general(g_src, hb, dn_t, preferred_element_type=f32).astype(bf16)
        h_dst = jax.lax.dot_general(g_dst, hb, dn_t, preferred_element_type=f32).astype(bf16)
        # message MLP: single K=384 contraction against the pre-stacked weight
        msg = jnp.maximum(
            jnp.dot(jnp.concatenate([h_src, h_dst, eb], axis=1), wm_ref[...],
                    preferred_element_type=f32) + bm_ref[...], 0.0)
        # scatter-add at BOTH endpoints, reusing the gather one-hots (no scat matrix)
        agg_scr[...] += jnp.dot(g_src + g_dst, msg.astype(bf16), preferred_element_type=f32)
        # keep the (not-yet-computed) edge-head block deterministic in phase 0
        epred_ref[...] = jnp.zeros_like(epred_ref)

    @pl.when((phase == 0) & (tile == n_tiles - 1))
    def _():
        # node update (K=256 stacked contraction) + node prediction head
        cat = jnp.concatenate([hb_scr[...], agg_scr[...].astype(bf16)], axis=1)
        h2 = jnp.maximum(jnp.dot(cat, w2_ref[...], preferred_element_type=f32) + b2_ref[...], 0.0)
        h2b = h2.astype(bf16)
        h2b_scr[...] = h2b
        npred_ref[...] = (jnp.dot(h2b, wnp_ref[...], preferred_element_type=f32)
                          + bnp_ref[...]).astype(npred_ref.dtype)

    @pl.when(phase == 1)
    def _():
        h2b = h2b_scr[...]
        h2_src = jax.lax.dot_general(g_src, h2b, dn_t, preferred_element_type=f32).astype(bf16)
        h2_dst = jax.lax.dot_general(g_dst, h2b, dn_t, preferred_element_type=f32).astype(bf16)
        epred_ref[...] = (jnp.dot(jnp.concatenate([h2_src, h2_dst, eb], axis=1), wep_ref[...],
                                  preferred_element_type=f32) + bep_ref[...]).astype(epred_ref.dtype)


def pallas_gnn(x_p, e_p, src_r, dst_r, params, tile_e):
    """Single fused, edge-tiled pallas_call for one GNN stage."""
    n_pad, e_pad = x_p.shape[0], e_p.shape[0]
    n_tiles = e_pad // tile_e
    inputs = [jnp.asarray(x_p), jnp.asarray(e_p),
              jnp.asarray(src_r), jnp.asarray(dst_r)] + list(params)

    in_specs = [
        pl.BlockSpec((n_pad, LANE), lambda p, t: (0, 0)),      # node features (resident)
        pl.BlockSpec((tile_e, LANE), lambda p, t: (t, 0)),     # edge features (per tile)
        pl.BlockSpec((1, tile_e), lambda p, t: (0, t)),        # src indices (lane-dense)
        pl.BlockSpec((1, tile_e), lambda p, t: (0, t)),        # dst indices (lane-dense)
    ] + [pl.BlockSpec(tuple(w.shape), lambda p, t: (0, 0)) for w in params]

    out_shape = (jax.ShapeDtypeStruct((n_pad, LANE), jnp.bfloat16),
                 jax.ShapeDtypeStruct((e_pad, LANE), jnp.bfloat16))
    out_specs = (pl.BlockSpec((n_pad, LANE), lambda p, t: (0, 0)),
                 pl.BlockSpec((tile_e, LANE), lambda p, t: (t, 0)))

    node_pred, edge_pred = pl.pallas_call(
        _gnn_kernel,
        out_shape=out_shape,
        grid=(2, n_tiles),                       # (phase, edge tile)
        in_specs=in_specs,
        out_specs=out_specs,
        scratch_shapes=[pltpu.VMEM((n_pad, LANE), jnp.bfloat16),   # h (layer 1)
                        pltpu.VMEM((n_pad, LANE), jnp.float32),    # aggregation accumulator
                        pltpu.VMEM((n_pad, LANE), jnp.bfloat16)],  # h2 (updated nodes)
        compiler_params=pltpu.CompilerParams(
            dimension_semantics=("arbitrary", "arbitrary"),
            vmem_limit_bytes=VMEM_LIMIT),
    )(*inputs)
    return node_pred, edge_pred


# ----------------------------------------------------------------------------
# Host-side helpers (graph / clustering glue — no Pallas equivalent)
# ----------------------------------------------------------------------------
def softmax_np(x, axis=-1):
    x = np.asarray(x, np.float32)
    m = x.max(axis=axis, keepdims=True)
    e = np.exp(x - m)
    return e / e.sum(axis=axis, keepdims=True)


def cdist_np(a, b):
    return np.linalg.norm(a[:, None, :] - b[None, :, :], axis=-1)


def complete_graph(batch_ids):
    """All (i<j) pairs of nodes sharing the same batch id, shape (2, E)."""
    src, dst = [], []
    batch_ids = np.asarray(batch_ids)
    for b in np.unique(batch_ids):
        ids = np.where(batch_ids == b)[0]
        for ii in range(len(ids)):
            for jj in range(ii + 1, len(ids)):
                src.append(ids[ii])
                dst.append(ids[jj])
    return np.array([src, dst], dtype=np.int64).reshape(2, -1)


def primary_assignment(node_pred, group_ids):
    """Boolean mask: node with highest primary score within each group."""
    node_pred = np.asarray(node_pred)
    group_ids = np.asarray(group_ids)
    primary = np.zeros(len(group_ids), dtype=bool)
    for g in np.unique(group_ids):
        mask = np.where(group_ids == g)[0]
        primary[mask[int(np.argmax(node_pred[mask][:, 1]))]] = True
    return primary


# ----------------------------------------------------------------------------
# Sub-modules (synthetic, deterministic weights)
# ----------------------------------------------------------------------------
def _init(key, shape):
    return np.asarray(jax.random.normal(key, shape, jnp.float32) / np.sqrt(shape[0]),
                      np.float32)


class FullCNN:
    """Per-point feature extractor standing in for the sparse UResNet + decoders."""
    SEG, PPN, EMB, SEED, MARG = 5, 5, 3, 1, 1

    def __init__(self, key, f_in=4, hidden=32, spatial_size=16.0):
        f_out = self.SEG + self.PPN + self.EMB + self.SEED + self.MARG
        k1, k2 = jax.random.split(key)
        self.f_in, self.hidden, self.f_out = f_in, hidden, f_out
        # weights zero-padded to 128 lanes once at init; bf16 for MXU operands
        self.w1 = jnp.asarray(_pad2(_init(k1, (f_in, hidden)), LANE, LANE), jnp.bfloat16)
        self.w2 = jnp.asarray(_pad2(_init(k2, (hidden, f_out)), LANE, LANE), jnp.bfloat16)
        self.b1 = jnp.zeros((1, LANE), jnp.float32)
        self.b2 = jnp.zeros((1, LANE), jnp.float32)
        self.spatial_size = spatial_size

    def __call__(self, data):
        data = np.asarray(data, np.float32)
        feats = np.concatenate([data[:, :3] / self.spatial_size, data[:, 4:5]], axis=1)
        out = pallas_mlp2(feats, self.w1, self.b1, self.w2, self.b2)  # (n, 128) on device
        seg = out[:, 0:5]
        pts = out[:, 5:10]
        emb = out[:, 10:13]
        seed = out[:, 13:14]
        marg = out[:, 14:15]
        return {'segmentation': [seg], 'points': [pts], 'embeddings': [emb],
                'seediness': [seed], 'margins': [marg]}


class GNN:
    """NNConv-style message-passing GNN; one fused, edge-tiled Pallas kernel per call."""

    def __init__(self, node_in, edge_in, hidden, key):
        ks = jax.random.split(key, 5)
        H = hidden
        self.node_in, self.edge_in, self.hidden = node_in, edge_in, H
        w_node1 = _init(ks[0], (node_in, H))
        w_msg = _init(ks[1], (2 * H + edge_in, H))
        w_node2 = _init(ks[2], (2 * H, H))
        w_np = _init(ks[3], (H, 2))
        w_ep = _init(ks[4], (2 * H + edge_in, 2))

        # concat weights pre-stacked at 128-lane offsets so the kernel can do a single
        # K=256/384 MXU contraction per concat (keeps the 256-wide MXU full on v6e/v7x)
        wm = np.zeros((3 * LANE, LANE), np.float32)
        wm[0:H, :H] = w_msg[:H]
        wm[LANE:LANE + H, :H] = w_msg[H:2 * H]
        wm[2 * LANE:2 * LANE + edge_in, :H] = w_msg[2 * H:]
        w2 = np.zeros((2 * LANE, LANE), np.float32)
        w2[0:H, :H] = w_node2[:H]
        w2[LANE:LANE + H, :H] = w_node2[H:]
        wep = np.zeros((3 * LANE, LANE), np.float32)
        wep[0:H, :2] = w_ep[:H]
        wep[LANE:LANE + H, :2] = w_ep[H:2 * H]
        wep[2 * LANE:2 * LANE + edge_in, :2] = w_ep[2 * H:]

        self.w1 = jnp.asarray(_pad2(w_node1, LANE, LANE), jnp.bfloat16)
        self.w_msg = jnp.asarray(wm, jnp.bfloat16)
        self.w_n2 = jnp.asarray(w2, jnp.bfloat16)
        self.w_np = jnp.asarray(_pad2(w_np, LANE, LANE), jnp.bfloat16)
        self.w_ep = jnp.asarray(wep, jnp.bfloat16)
        self.b1 = jnp.zeros((1, LANE), jnp.float32)
        self.bm = jnp.zeros((1, LANE), jnp.float32)
        self.b2 = jnp.zeros((1, LANE), jnp.float32)
        self.b_np = jnp.zeros((1, LANE), jnp.float32)
        self.b_ep = jnp.zeros((1, LANE), jnp.float32)

    def __call__(self, x, edge_index, e, xbatch):
        x = np.asarray(x, np.float32)
        e = np.asarray(e, np.float32).reshape(-1, self.edge_in)
        n = x.shape[0]
        n_e = edge_index.shape[1]
        # bucketed pad sizes (powers of two) -> few distinct Mosaic compiles;
        # e_pad multiple of 128 -> lane-dense index vectors and edge tiles
        n_pad = max(_next_pow2(n), 32)
        e_pad = max(_next_pow2(n_e), 128)
        tile_e = min(e_pad, 512)

        # host-side numpy padding straight into bf16 (halves H2D + HBM->VMEM bytes)
        x_p = np.zeros((n_pad, LANE), dtype=jnp.bfloat16)
        x_p[:n, :self.node_in] = x[:, :self.node_in]
        e_p = np.zeros((e_pad, LANE), dtype=jnp.bfloat16)
        if n_e:
            e_p[:n_e, :self.edge_in] = e[:, :self.edge_in]

        # padded edges use -1 so the in-kernel one-hots never match any node row
        src_r = np.full((1, e_pad), -1, np.int32)
        dst_r = np.full((1, e_pad), -1, np.int32)
        if n_e:
            src_r[0, :n_e] = np.asarray(edge_index[0], np.int32)
            dst_r[0, :n_e] = np.asarray(edge_index[1], np.int32)

        params = [self.w1, self.b1, self.w_msg, self.bm, self.w_n2, self.b2,
                  self.w_np, self.b_np, self.w_ep, self.b_ep]
        node_pred, edge_pred = pallas_gnn(x_p, e_p, src_r, dst_r, params, tile_e)
        # only the 2 logit lanes leave the kernel path; heads were stored as bf16
        return {'node_pred': [node_pred[:n, :2].astype(jnp.float32)],
                'edge_pred': [edge_pred[:n_e, :2].astype(jnp.float32)]}


# ----------------------------------------------------------------------------
# Full chain driver
# ----------------------------------------------------------------------------
class FullChainPallas:
    def __init__(self, cfg, key):
        k_cnn, k_p, k_i = jax.random.split(key, 3)
        self.full_cnn = FullCNN(k_cnn)
        pcfg = cfg.get('particle_edge_model', {})
        icfg = cfg.get('interaction_edge_model', {})
        self.node_feat_dim = 16
        self.edge_feat_dim = 4
        self.particle_gnn = GNN(pcfg.get('node_feats', self.node_feat_dim + 6),
                                pcfg.get('edge_feats', self.edge_feat_dim),
                                pcfg.get('hidden', 32), k_p)
        self.inter_gnn = GNN(icfg.get('node_feats', self.node_feat_dim + 12),
                             icfg.get('edge_feats', self.edge_feat_dim),
                             icfg.get('hidden', 32), k_i)
        self.min_frag_size = cfg['particle_gnn'].get('node_min_size', -1)
        self.train_stage = cfg['full_chain'].get('train', True)

    # --- geometric node / edge encoders (host glue over variable-size clusters) ---
    def node_encoder(self, data, clusters):
        feats = []
        for c in clusters:
            c = np.asarray(c, np.int64)
            xyz = data[c, :3]
            v = data[c, 4]
            center = xyz.mean(0)
            std = xyz.std(0)
            mn = xyz.min(0)
            mx = xyz.max(0)
            feats.append(np.concatenate(
                [center, std, mn, mx,
                 [float(len(c)), v.mean(), v.std(), np.linalg.norm(mx - mn)]]))
        return np.array(feats, dtype=np.float32).reshape(-1, self.node_feat_dim)

    def edge_encoder(self, data, clusters, edge_index):
        centers = np.array([data[np.asarray(c, np.int64), :3].mean(0) for c in clusters],
                           dtype=np.float32)
        feats = []
        for k in range(edge_index.shape[1]):
            i, j = int(edge_index[0, k]), int(edge_index[1, k])
            d = centers[j] - centers[i]
            feats.append(np.concatenate([d, [np.linalg.norm(d)]]))
        return np.array(feats, dtype=np.float32).reshape(-1, self.edge_feat_dim)

    # -----------------------------------------------------------------------
    def forward(self, input):
        data = np.asarray(input[0], dtype=np.float32)
        result = self.full_cnn(data)
        points = np.asarray(result['points'][0])   # single device->host sync for PPN glue

        batch_labels = data[:, 3]
        fragments = []
        frag_batch_ids = []
        if self.train_stage:
            fragment_labels = data[:, 5]
            semantic_labels = data[:, -1]
            for batch_id in np.unique(batch_labels):
                batch_mask = np.nonzero(batch_labels == batch_id)[0]
                fragment_batch = fragment_labels[batch_mask]
                for fid in np.unique(fragment_batch):
                    if np.sum(fragment_batch == fid) < self.min_frag_size:
                        continue
                    fragments.append(batch_mask[fragment_batch == fid])
                    frag_batch_ids.append(int(batch_id))
        else:
            # TODO(synk): inference-path dense CNN clustering (fit_predict / gaussian_kernel)
            # has no clean Pallas equivalent here; only the training path is implemented.
            raise NotImplementedError("inference-stage clustering not implemented")

        fragments = np.array([f for f in fragments if len(f)])
        frag_batch_ids = np.array(frag_batch_ids)
        frag_seg = np.empty(len(fragments), dtype=np.int32)
        for i, f in enumerate(fragments):
            vals, cnts = np.unique(semantic_labels[f], return_counts=True)
            frag_seg[i] = int(vals[np.argmax(cnts)])

        # ---------------- particle (shower-fragment grouping) GNN ----------------
        em_mask = np.where(frag_seg == 0)[0]
        edge_index = complete_graph(frag_batch_ids[em_mask])
        x = self.node_encoder(data, fragments[em_mask])
        e = self.edge_encoder(data, fragments[em_mask], edge_index)

        ppn_feats = np.empty((0, 6), dtype=np.float32)
        for f in fragments[em_mask]:
            scores = softmax_np(points[f][:, 3:5], axis=1)
            argmax = int(np.argmax(scores[:, -1]))
            start = data[f][argmax, :3] + points[f][argmax, :3] + 0.5
            direc = (data[f][:, :3] - start).mean(axis=0)
            if np.linalg.norm(direc):
                direc = direc / np.linalg.norm(direc)
            ppn_feats = np.concatenate(
                (ppn_feats, np.concatenate([start, direc]).reshape(1, -1).astype(np.float32)),
                axis=0)
        x = np.concatenate([x, ppn_feats], axis=1).astype(np.float32)

        xbatch = frag_batch_ids[em_mask]
        gnn_output = self.particle_gnn(x, edge_index, e, xbatch)
        # convert once; the host-side grouping / primary assignment needs numpy
        node_pred_all = np.asarray(gnn_output['node_pred'][0])
        edge_pred_all = np.asarray(gnn_output['edge_pred'][0])

        _, counts = np.unique(data[:, 3], return_counts=True)
        vids = np.concatenate([np.arange(int(n)) for n in counts])
        cids = np.concatenate(
            [np.arange(int(n)) for n in np.unique(frag_batch_ids[em_mask], return_counts=True)[1]])
        bcids = [np.where(frag_batch_ids[em_mask] == b)[0] for b in range(len(counts))]
        beids = [np.where(frag_batch_ids[em_mask][edge_index[0]] == b)[0]
                 for b in range(len(counts))]

        node_pred = [node_pred_all[b] for b in bcids]
        edge_pred = [edge_pred_all[b] for b in beids]
        edge_index = [cids[edge_index[:, b]].T for b in beids]
        frags = [np.array([vids[c] for c in fragments[em_mask][b]]) for b in bcids]

        result.update({'fragments': [frags],
                       'frag_node_pred': [node_pred],
                       'frag_edge_pred': [edge_pred],
                       'frag_edge_index': [edge_index]})

        group_ids = []
        for b in range(len(counts)):
            if not len(frags[b]):
                group_ids.append(np.array([], dtype=np.int64))
            elif self.train_stage:
                batch_group_ids = []
                for i, f in enumerate(frags[b]):
                    vals, cnts = np.unique(data[f, 6], return_counts=True)
                    batch_group_ids.append(int(vals[np.argmax(cnts)]))
                group_ids.append(np.array(batch_group_ids, dtype=np.int32))
            else:
                # TODO(synk): node_assignment_score (inference grouping) not implemented.
                raise NotImplementedError
        result.update({'frag_group_pred': [group_ids]})

        # ---------------- build particles, interaction GNN ----------------
        non_em_mask = np.where((frag_seg != 0) & (frag_seg != 4))[0]
        particles = fragments[non_em_mask].tolist()
        part_batch_ids = frag_batch_ids[non_em_mask]
        part_primary_ids = -1 * np.ones(len(non_em_mask), dtype=np.int32)
        part_seg = frag_seg[non_em_mask]
        for b in range(len(counts)):
            batch_mask = np.where(frag_batch_ids[em_mask] == b)[0]
            primary_labels = primary_assignment(node_pred[b], group_ids[b])
            for g in np.unique(group_ids[b]):
                group_mask = np.where(group_ids[b] == g)[0]
                particles.append(np.concatenate(frags[b][group_mask]))
                group_batch = np.unique(frag_batch_ids[em_mask][batch_mask][group_mask])
                primary_id = group_mask[primary_labels[group_mask]]
                assert len(group_batch) == 1
                part_batch_ids = np.concatenate((part_batch_ids, group_batch[0].reshape(1)))
                part_seg = np.concatenate((part_seg, [0]))
                part_primary_ids = np.concatenate((part_primary_ids, primary_id))

        part_order = np.argsort(part_batch_ids)
        particles = np.array(particles)[part_order]
        part_batch_ids = part_batch_ids[part_order]
        part_seg = part_seg[part_order]
        part_primary_ids = part_primary_ids[part_order]

        edge_index = complete_graph(part_batch_ids)
        x = self.node_encoder(data, particles)
        e = self.edge_encoder(data, particles, edge_index)

        ppn_feats = np.empty((0, 12), dtype=np.float32)
        for i, p in enumerate(particles):
            p = np.asarray(p, np.int64)
            if part_seg[i] == 1:
                dist_mat = cdist_np(data[p, :3], data[p, :3])
                idx = int(np.argmax(dist_mat))
                start_id, end_id = int(idx / len(p)), int(idx % len(p))
                start, end = data[p[start_id], :3], data[p[end_id], :3]
                direc = end - start
            else:
                if part_seg[i] == 0:
                    p = np.asarray(frags[int(part_batch_ids[i])][int(part_primary_ids[i])],
                                   np.int64)
                scores = softmax_np(points[p][:, 3:5], axis=1)
                argmax = int(np.argmax(scores[:, -1]))
                start = end = data[p][argmax, :3] + points[p][argmax, :3] + 0.5
                direc = (data[p][:, :3] - start).mean(axis=0)
            if np.linalg.norm(direc):
                direc = direc / np.linalg.norm(direc)
            sem_type = np.array([float(part_seg[i])], dtype=np.float32)
            val_std = float(data[p, 4].std(ddof=1)) if len(p) > 1 else 0.0  # avoid NaN singleton
            values = np.array([data[p, 4].mean(), val_std], dtype=np.float32)
            ppn_feats = np.concatenate(
                (ppn_feats,
                 np.concatenate([values, sem_type, start, end, direc]).reshape(1, -1)
                 .astype(np.float32)), axis=0)
        x = np.concatenate([x, ppn_feats], axis=1).astype(np.float32)

        xbatch = part_batch_ids
        gnn_output = self.inter_gnn(x, edge_index, e, xbatch)
        inter_edge_pred_all = np.asarray(gnn_output['edge_pred'][0])   # single conversion

        cids = np.concatenate(
            [np.arange(int(n)) for n in np.unique(part_batch_ids, return_counts=True)[1]])
        bcids = [np.where(part_batch_ids == b)[0] for b in range(len(counts))]
        beids = [np.where(part_batch_ids[edge_index[0]] == b)[0] for b in range(len(counts))]
        edge_pred = [inter_edge_pred_all[b] for b in beids]
        edge_index = [cids[edge_index[:, b]].T for b in beids]
        particles = [np.array([vids[c] for c in particles[b]]) for b in bcids]
        result.update({'particles': [particles],
                       'inter_edge_pred': [edge_pred],
                       'inter_edge_index': [edge_index]})
        return result


# ----------------------------------------------------------------------------
if __name__ == "__main__":
    key = jax.random.PRNGKey(0)
    spatial = 16.0
    n_batches = 2
    pts_per_frag = 12
    n_em_frags = 3      # semantic class 0 (showers)
    n_track_frags = 1   # semantic class 1 (tracks)
    frags_per_batch = n_em_frags + n_track_frags
    n_total = n_batches * frags_per_batch * pts_per_frag

    kc, kv, kw = jax.random.split(key, 3)
    coords = np.asarray(jax.random.uniform(kc, (n_total, 3), minval=0.0, maxval=spatial),
                        np.float32)
    vals = np.asarray(jax.random.uniform(kv, (n_total,), minval=0.1, maxval=1.0), np.float32)

    rows = []
    idx = 0
    for b in range(n_batches):
        for fid in range(frags_per_batch):
            sem = 0.0 if fid < n_em_frags else 1.0
            group = float(fid)
            for _ in range(pts_per_frag):
                rows.append([coords[idx, 0], coords[idx, 1], coords[idx, 2],
                             float(b), vals[idx], float(fid), group, sem])
                idx += 1
    data = np.array(rows, dtype=np.float32)   # (96, 8): [x,y,z,batch,val,frag,group,sem]

    cfg = {
        'particle_gnn': {'node_min_size': 2},
        'interaction_gnn': {},
        'particle_edge_model': {'node_feats': 22, 'edge_feats': 4, 'hidden': 32},
        'interaction_edge_model': {'node_feats': 28, 'edge_feats': 4, 'hidden': 32},
        'full_chain': {'train': True},
    }

    model = FullChainPallas(cfg, key=kw)
    result = model.forward([data])

    jax.block_until_ready(result['segmentation'][0])
    assert result['segmentation'][0].shape == (data.shape[0], 5)
    assert len(result['fragments'][0]) == n_batches
    assert len(result['particles'][0]) == n_batches
    print("KERNEL_OK")
</pallas_src>

<mosaic_0001>
module attributes {stable_mosaic.version = 11 : i64} {
  func.func @_mlp2_kernel(%arg0: i32, %arg1: memref<128x128xbf16, #tpu.memory_space<vmem>>, %arg2: memref<128x128xbf16, #tpu.memory_space<vmem>>, %arg3: memref<1x128xf32, #tpu.memory_space<vmem>>, %arg4: memref<128x128xbf16, #tpu.memory_space<vmem>>, %arg5: memref<1x128xf32, #tpu.memory_space<vmem>>, %arg6: memref<128x128xf32, #tpu.memory_space<vmem>>) attributes {dimension_semantics = [#tpu.dimension_semantics<parallel>], iteration_bounds = array<i64: 1>, scalar_prefetch = 0 : i64, scratch_operands = 0 : i64, tpu.core_type = #tpu.core_type<tc>, window_params = [{transform_indices = @transform_0, window_bounds = array<i64: 128, 128>}, {pipeline_mode = #tpu.pipeline_mode<synchronous>, transform_indices = @transform_1, window_bounds = array<i64: 128, 128>}, {pipeline_mode = #tpu.pipeline_mode<synchronous>, transform_indices = @transform_2, window_bounds = array<i64: 1, 128>}, {pipeline_mode = #tpu.pipeline_mode<synchronous>, transform_indices = @transform_3, window_bounds = array<i64: 128, 128>}, {pipeline_mode = #tpu.pipeline_mode<synchronous>, transform_indices = @transform_4, window_bounds = array<i64: 1, 128>}, {transform_indices = @transform_5, window_bounds = array<i64: 128, 128>}]} {
    %c0 = arith.constant 0 : index
    %c0_0 = arith.constant 0 : index
    %0 = vector.load %arg1[%c0, %c0_0] : memref<128x128xbf16, #tpu.memory_space<vmem>>, vector<128x128xbf16>
    %c0_1 = arith.constant 0 : index
    %c0_2 = arith.constant 0 : index
    %1 = vector.load %arg2[%c0_1, %c0_2] : memref<128x128xbf16, #tpu.memory_space<vmem>>, vector<128x128xbf16>
    %cst = arith.constant dense<0.000000e+00> : vector<128x128xf32>
    %2 = tpu.matmul %0, %1, %cst {dimension_numbers = #tpu.dot_dimension_numbers<[1], [0], [0], [1], [0, 0, 1, 1], [], []>} : vector<128x128xbf16>, vector<128x128xbf16>, vector<128x128xf32> -> vector<128x128xf32>
    %c0_3 = arith.constant 0 : index
    %c0_4 = arith.constant 0 : index
    %3 = vector.load %arg3[%c0_3, %c0_4] : memref<1x128xf32, #tpu.memory_space<vmem>>, vector<1x128xf32>
    %4 = vector.broadcast %3 : vector<1x128xf32> to vector<128x128xf32>
    %5 = arith.addf %2, %4 : vector<128x128xf32>
    %cst_5 = arith.constant 0.000000e+00 : f32
    %6 = vector.broadcast %cst_5 : f32 to vector<128x128xf32>
    %7 = arith.maximumf %5, %6 : vector<128x128xf32>
    %8 = arith.truncf %7 : vector<128x128xf32> to vector<128x128xbf16>
    %c0_6 = arith.constant 0 : index
    %c0_7 = arith.constant 0 : index
    %9 = vector.load %arg4[%c0_6, %c0_7] : memref<128x128xbf16, #tpu.memory_space<vmem>>, vector<128x128xbf16>
    %cst_8 = arith.constant dense<0.000000e+00> : vector<128x128xf32>
    %10 = tpu.matmul %8, %9, %cst_8 {dimension_numbers = #tpu.dot_dimension_numbers<[1], [0], [0], [1], [0, 0, 1, 1], [], []>} : vector<128x128xbf16>, vector<128x128xbf16>, vector<128x128xf32> -> vector<128x128xf32>
    %c0_9 = arith.constant 0 : index
    %c0_10 = arith.constant 0 : index
    %11 = vector.load %arg5[%c0_9, %c0_10] : memref<1x128xf32, #tpu.memory_space<vmem>>, vector<1x128xf32>
    %12 = vector.broadcast %11 : vector<1x128xf32> to vector<128x128xf32>
    %13 = arith.addf %10, %12 : vector<128x128xf32>
    %c0_11 = arith.constant 0 : index
    %c0_12 = arith.constant 0 : index
    %14 = vector.load %arg6[%c0_11, %c0_12] : memref<128x128xf32, #tpu.memory_space<vmem>>, vector<128x128xf32>
    tpu.vector_store %arg6[%c0_11, %c0_12], %13 {strides = array<i32>} : memref<128x128xf32, #tpu.memory_space<vmem>>, vector<128x128xf32>,
    return
  }
  func.func @transform_0(%arg0: i32) -> (i32, i32) {
    %c0_i32 = arith.constant 0 : i32
    %c0_i32_0 = arith.constant 0 : i32
    return %arg0, %c0_i32 : i32, i32
  }
  func.func @transform_1(%arg0: i32) -> (i32, i32) {
    %c0_i32 = arith.constant 0 : i32
    %c0_i32_0 = arith.constant 0 : i32
    %c0_i32_1 = arith.constant 0 : i32
    return %c0_i32, %c0_i32_0 : i32, i32
  }
  func.func @transform_2(%arg0: i32) -> (i32, i32) {
    %c0_i32 = arith.constant 0 : i32
    %c0_i32_0 = arith.constant 0 : i32
    %c0_i32_1 = arith.constant 0 : i32
    return %c0_i32, %c0_i32_0 : i32, i32
  }
  func.func @transform_3(%arg0: i32) -> (i32, i32) {
    %c0_i32 = arith.constant 0 : i32
    %c0_i32_0 = arith.constant 0 : i32
    %c0_i32_1 = arith.constant 0 : i32
    return %c0_i32, %c0_i32_0 : i32, i32
  }
  func.func @transform_4(%arg0: i32) -> (i32, i32) {
    %c0_i32 = arith.constant 0 : i32
    %c0_i32_0 = arith.constant 0 : i32
    %c0_i32_1 = arith.constant 0 : i32
    return %c0_i32, %c0_i32_0 : i32, i32
  }
  func.func @transform_5(%arg0: i32) -> (i32, i32) {
    %c0_i32 = arith.constant 0 : i32
    %c0_i32_0 = arith.constant 0 : i32
    return %arg0, %c0_i32 : i32, i32
  }
}

</mosaic_0001>

<bundles_post_ra>
// kernel: tpu_custom_call.1
= control target key start
LH: loop header
LB: loop body
LE: loop exit
PB: predicated region body
PF: predicated region fallthrough
CT: control target
= control target key end

     0   :  { %10 = vsyncpa [#allocation3], 0  ;;  %s817_s0 = inlined_call_operand.hbm [shape: bf16[128,128], index: 0, kind: input, shape index: {}]   ;;  %s818_s1 = inlined_call_operand.hbm [shape: bf16[128,128], index: 1, kind: input, shape index: {}]   ;;  %s819_s2 = inlined_call_operand.vmem [shape: f32[1,128], index: 2, kind: input, shape index: {}]   ;;  %s820_s3 = inlined_call_operand.hbm [shape: bf16[128,128], index: 3, kind: input, shape index: {}]   ;;  %s821_s4 = inlined_call_operand.vmem [shape: f32[1,128], index: 4, kind: input, shape index: {}]   ;;  %s822_s5 = inlined_call_operand.hbm [shape: f32[128,128], index: 5, kind: output, shape index: {}]  }
   0x1   :  { %11 = vsyncpa [#allocation6], 0 }
   0x2   :  { %12 = vsyncpa [#allocation4], 0  ;;  %s761_s18 = smov [#allocation5]   ;;  %s762_s20 = smov [#allocation2]  }
   0x3   :  { %s30_s19 = sshll.u32 %s761_s18, 4  ;;  %s18_s21 = sshll.u32 %s762_s20, 4  ;;  %s31_s19 = int_to_ptr.vmem [resolvable:$true] %s30_s19  ;;  %s19_s21 = int_to_ptr.vmem [resolvable:$true] %s18_s21 }
   0x4   :  { %s683_s22 = scalar_lea.vmem %s31_s19, 1024  ;;  %p688_p1 = scmp.lt.s32.totalorder %s31_s19, %s31_s19 }
   0x5   :  { %p684_p0 = scmp.ne.s32.totalorder %s31_s19, %s683_s22  ;;  %p689_p2 = scmp.lt.s32.totalorder %s683_s22, %s683_s22 }
   0x7   :  { %p690_p3 = por %p689_p2, %p688_p1 }
   0x9   :  { %p691_p4 = pnand %p690_p3, %p684_p0 }
   0xb   :  { %694 = shalt.err (!%p691_p4)
}
   0xc   :  { %s763_s23 = smov 64   ;;  %s764_s24 = smov 4  }
   0xd   :  { %36 = dma.hbm_to_vmem [thread:$0]  %s818_s1, 1024, %s31_s19, [#allocation6], %s763_s23, %s763_s23, %s764_s24  }
   0xe   :  { %s703_s27 = scalar_lea.vmem %s19_s21, 1024  ;;  %p708_p6 = scmp.lt.s32.totalorder %s19_s21, %s19_s21 }
   0xf   :  { %p704_p5 = scmp.ne.s32.totalorder %s19_s21, %s703_s27  ;;  %p709_p7 = scmp.lt.s32.totalorder %s703_s27, %s703_s27 }
  0x11   :  { %p710_p8 = por %p709_p7, %p708_p6 }
  0x13   :  { %p711_p9 = pnand %p710_p8, %p704_p5 }
  0x15   :  { %714 = shalt.err (!%p711_p9)
}
  0x16   :  { %24 = dma.hbm_to_vmem [thread:$0]  %s817_s0, 1024, %s19_s21, [#allocation3], %s763_s23, %s763_s23, %s764_s24  }
  0x17   :  { %s765_s30 = smov [#allocation7]  }
  0x18   :  { %s44_s6 = sshll.u32 %s765_s30, 4  ;;  %s45_s6 = int_to_ptr.vmem [resolvable:$true] %s44_s6 }
  0x19   :  { %s723_s7 = scalar_lea.vmem %s45_s6, 1024  ;;  %p728_p11 = scmp.lt.s32.totalorder %s45_s6, %s45_s6 }
  0x1a   :  { %p724_p10 = scmp.ne.s32.totalorder %s45_s6, %s723_s7  ;;  %p729_p12 = scmp.lt.s32.totalorder %s723_s7, %s723_s7 }
  0x1c   :  { %p730_p13 = por %p729_p12, %p728_p11 }
  0x1e   :  { %p731_p0 = pnand %p730_p13, %p724_p10 }
  0x20   :  { %734 = shalt.err (!%p731_p0)
}
  0x21   :  { %50 = dma.hbm_to_vmem [thread:$0]  %s820_s3, 1024, %s45_s6, [#allocation6], %s763_s23, %s763_s23, %s764_s24  }
  0x22   :  { %755 = dma.done.wait [#allocation3], 1024  }
  0x23   :  { %756 = vsyncadd [#allocation3], 4294966272 }
  0x24   :  { %757 = dma.done.wait [#allocation6], 2048  }
  0x25   :  { %758 = vsyncadd [#allocation6], 4294965248  ;;  %v651_v0 = vld [vmem:[#allocation5 + $0x38] sm:$0xff]   ;;  %v652_v1 = vld [vmem:[#allocation5 + $0x30] sm:$0xff]  }
  0x26   :  { %579 = vmatprep.subr.bf16.mxu0 %v651_v0  ;;  %v653_v2 = vld [vmem:[#allocation5 + $0x28] sm:$0xff]   ;;  %v654_v3 = vld [vmem:[#allocation5 + $0x20] sm:$0xff]   ;;  %v655_v5 = vld [vmem:[#allocation5 + $0x18] sm:$0xff]  }
  0x27   :  { %580 = vmatpush3.bf16.msra.mxu0 %v651_v0  ;;  %v659_v4 = vld [vmem:[#allocation2] sm:$0xff]   ;;  %v656_v6 = vld [vmem:[#allocation5 + $0x10] sm:$0xff]   ;;  %v667_v7 = vld [vmem:[#allocation7 + $0x38] sm:$0xff]  }
  0x28   :  { %581 = vmatprep.subr.bf16.mxu0 %v652_v1  ;;  %595 = vmatprep.mubr.bf16.mxu0 %v659_v4  ;;  %v668_v8 = vld [vmem:[#allocation7 + $0x30] sm:$0xff]   ;;  %v657_v9 = vld [vmem:[#allocation5 + $0x8] sm:$0xff]   ;;  %v658_v11 = vld [vmem:[#allocation5] sm:$0xff]  }
  0x29   :  { %611 = vmatprep.subr.bf16.mxu1 %v667_v7  ;;  %v669_v10 = vld [vmem:[#allocation7 + $0x28] sm:$0xff]   ;;  %v670_v12 = vld [vmem:[#allocation7 + $0x20] sm:$0xff]   ;;  %v671_v13 = vld [vmem:[#allocation7 + $0x18] sm:$0xff]  }
  0x2a   :  { %612 = vmatpush3.bf16.msra.mxu1 %v667_v7  ;;  %v660_v14 = vld [vmem:[#allocation2 + $0x8] sm:$0xff]   ;;  %v661_v15 = vld [vmem:[#allocation2 + $0x10] sm:$0xff]   ;;  %v662_v16 = vld [vmem:[#allocation2 + $0x18] sm:$0xff]  }
  0x2b   :  { %582 = vmatpush3.bf16.msra.mxu0 %v652_v1  ;;  %613 = vmatprep.subr.bf16.mxu1 %v668_v8  ;;  %v663_v17 = vld [vmem:[#allocation2 + $0x20] sm:$0xff]   ;;  %v664_v18 = vld [vmem:[#allocation2 + $0x28] sm:$0xff]   ;;  %v665_v19 = vld [vmem:[#allocation2 + $0x30] sm:$0xff]  }
  0x2c   :  { %583 = vmatprep.subr.bf16.mxu0 %v653_v2  ;;  %v666_v20 = vld [vmem:[#allocation2 + $0x38] sm:$0xff]   ;;  %v672_v21 = vld [vmem:[#allocation7 + $0x10] sm:$0xff]   ;;  %v673_v22 = vld [vmem:[#allocation7 + $0x8] sm:$0xff]  }
  0x2d   :  { %v674_v23 = vld [vmem:[#allocation7] sm:$0xff]  }
  0x2e   :  { %614 = vmatpush3.bf16.msra.mxu1 %v668_v8  ;;  %v521_v26 = vld [vmem:[%s819_s2] ss:$0 sm:$0xff] }
  0x2f   :  { %584 = vmatpush3.bf16.msra.mxu0 %v653_v2  ;;  %615 = vmatprep.subr.bf16.mxu1 %v669_v10 }
  0x30   :  { %585 = vmatprep.subr.bf16.mxu0 %v654_v3 }
  0x32   :  { %616 = vmatpush3.bf16.msra.mxu1 %v669_v10 }
  0x33   :  { %586 = vmatpush3.bf16.msra.mxu0 %v654_v3  ;;  %617 = vmatprep.subr.bf16.mxu1 %v670_v12 }
  0x34   :  { %587 = vmatprep.subr.bf16.mxu0 %v655_v5 }
  0x36   :  { %618 = vmatpush3.bf16.msra.mxu1 %v670_v12 }
  0x37   :  { %588 = vmatpush3.bf16.msra.mxu0 %v655_v5  ;;  %619 = vmatprep.subr.bf16.mxu1 %v671_v13 }
  0x38   :  { %589 = vmatprep.subr.bf16.mxu0 %v656_v6 }
  0x3a   :  { %620 = vmatpush3.bf16.msra.mxu1 %v671_v13 }
  0x3b   :  { %590 = vmatpush3.bf16.msra.mxu0 %v656_v6  ;;  %621 = vmatprep.subr.bf16.mxu1 %v672_v21 }
  0x3c   :  { %591 = vmatprep.subr.bf16.mxu0 %v657_v9 }
  0x3e   :  { %622 = vmatpush3.bf16.msra.mxu1 %v672_v21 }
  0x3f   :  { %592 = vmatpush3.bf16.msra.mxu0 %v657_v9  ;;  %623 = vmatprep.subr.bf16.mxu1 %v673_v22 }
  0x40   :  { %593 = vmatprep.subr.bf16.mxu0 %v658_v11 }
  0x42   :  { %624 = vmatpush3.bf16.msra.mxu1 %v673_v22 }
  0x43   :  { %594 = vmatpush3.bf16.msra.mxu0 %v658_v11  ;;  %625 = vmatprep.subr.bf16.mxu1 %v674_v23 }
  0x46   :  { %596 = vmatmul.mubr.bf16.vlgmr.msra.gmra.mxu0 %v660_v14  ;;  %626 = vmatpush3.bf16.msra.mxu1 %v674_v23 }
  0x47   :  { %599 = vmatprep.mubr.bf16.mxu0 %v661_v15 }
  0x4e   :  { %600 = vmatmul.mubr.bf16.gmra.mxu0 %v662_v16 }
  0x4f   :  { %603 = vmatprep.mubr.bf16.mxu0 %v663_v17  ;;  %v538_v17 = vld [vmem:[%s821_s4] ss:$0 sm:$0xff]  ;;  %s766_s4 = smov [#allocation8]  }
  0x50   :  { %s508_s10 = sshll.u32 %s766_s4, 4  ;;  %s509_s10 = int_to_ptr.vmem [resolvable:$true] %s508_s10 }
  0x51   :  { %s735_s11 = scalar_lea.vmem %s509_s10, 2048  ;;  %p740_p2 = scmp.lt.s32.totalorder %s509_s10, %s509_s10 }
  0x52   :  { %p736_p1 = scmp.ne.s32.totalorder %s509_s10, %s735_s11  ;;  %p741_p3 = scmp.lt.s32.totalorder %s735_s11, %s735_s11 }
  0x54   :  { %p742_p4 = por %p741_p3, %p740_p2 }
  0x56   :  { %604 = vmatmul.mubr.bf16.gmra.mxu0 %v664_v18  ;;  %p743_p5 = pnand %p742_p4, %p736_p1 }
  0x57   :  { %607 = vmatprep.mubr.bf16.mxu0 %v665_v19 }
  0x5e   :  { %608 = vmatmul.mubr.bf16.gmra.mxu0 %v666_v20 }
 0x106   :  { %v597_v24 = vpop.f32.mrf.mxu0 }
 0x107   :  { %v241_v30 = vadd.f32 %v597_v24, %v521_v26 }
 0x108   :  { %v232_v25 = vpop.f32.mrf.mxu0 }
 0x109   :  { %v233_v28 = vadd.f32 %v521_v26, %v232_v25  ;;  %v297_v37 = vmax.f32 %v241_v30, 0.0 }
 0x10a   :  { %v598_v27 = vpop.f32.mrf.mxu0 }
 0x10b   :  { %v244_v29 = vadd.f32 %v598_v27, %v521_v26  ;;  %v295_v35 = vmax.f32 %v233_v28, 0.0 }
 0x10c   :  { %v235_v31 = vpop.f32.mrf.mxu0 }
 0x10d   :  { %v236_v32 = vadd.f32 %v521_v26, %v235_v31  ;;  %v298_v33 = vmax.f32 %v244_v29, 0.0 }
 0x10e   :  { %v601_v34 = vpop.f32.mrf.mxu0 }
 0x10f   :  { %v296_v36 = vmax.f32 %v236_v32, 0.0  ;;  %v312_v40 = vpack.c.bf16 %v298_v33, %v297_v37  ;;  %v257_v44 = vadd.f32 %v601_v34, %v521_v26 }
 0x110   :  { %v248_v38 = vpop.f32.mrf.mxu0 }
 0x111   :  { %v311_v39 = vpack.c.bf16 %v296_v36, %v295_v35  ;;  %v249_v42 = vadd.f32 %v521_v26, %v248_v38  ;;  %v301_v51 = vmax.f32 %v257_v44, 0.0 }
 0x112   :  { %v602_v41 = vpop.f32.mrf.mxu0 }
 0x113   :  { %v260_v43 = vadd.f32 %v602_v41, %v521_v26  ;;  %627 = vmatprep.mubr.bf16.mxu1 %v311_v39  ;;  %v299_v49 = vmax.f32 %v249_v42, 0.0 }
 0x114   :  { %v251_v45 = vpop.f32.mrf.mxu0  ;;  %628 = vmatmul.mubr.bf16.vlgmr.msra.gmra.mxu1 %v312_v40 }
 0x115   :  { %v252_v46 = vadd.f32 %v521_v26, %v251_v45  ;;  %v302_v47 = vmax.f32 %v260_v43, 0.0 }
 0x116   :  { %v605_v48 = vpop.f32.mrf.mxu0 }
 0x117   :  { %v300_v50 = vmax.f32 %v252_v46, 0.0  ;;  %v314_v54 = vpack.c.bf16 %v302_v47, %v301_v51  ;;  %v273_v58 = vadd.f32 %v605_v48, %v521_v26 }
 0x118   :  { %v264_v52 = vpop.f32.mrf.mxu0 }
 0x119   :  { %v313_v53 = vpack.c.bf16 %v300_v50, %v299_v49  ;;  %v265_v56 = vadd.f32 %v521_v26, %v264_v52  ;;  %v305_v1 = vmax.f32 %v273_v58, 0.0 }
 0x11a   :  { %v606_v55 = vpop.f32.mrf.mxu0 }
 0x11b   :  { %v276_v57 = vadd.f32 %v606_v55, %v521_v26  ;;  %631 = vmatprep.mubr.bf16.mxu1 %v313_v53  ;;  %v303_v63 = vmax.f32 %v265_v56, 0.0 }
 0x11c   :  { %v267_v59 = vpop.f32.mrf.mxu0  ;;  %632 = vmatmul.mubr.bf16.gmra.mxu1 %v314_v54 }
 0x11d   :  { %v268_v60 = vadd.f32 %v521_v26, %v267_v59  ;;  %v306_v61 = vmax.f32 %v276_v57, 0.0 }
 0x11e   :  { %v609_v62 = vpop.f32.mrf.mxu0 }
 0x11f   :  { %v304_v0 = vmax.f32 %v268_v60, 0.0  ;;  %v316_v4 = vpack.c.bf16 %v306_v61, %v305_v1  ;;  %v289_v8 = vadd.f32 %v609_v62, %v521_v26 }
 0x120   :  { %v280_v2 = vpop.f32.mrf.mxu0 }
 0x121   :  { %v315_v3 = vpack.c.bf16 %v304_v0, %v303_v63  ;;  %v281_v6 = vadd.f32 %v521_v26, %v280_v2  ;;  %v309_v14 = vmax.f32 %v289_v8, 0.0 }
 0x122   :  { %v610_v5 = vpop.f32.mrf.mxu0 }
 0x123   :  { %v292_v7 = vadd.f32 %v610_v5, %v521_v26  ;;  %635 = vmatprep.mubr.bf16.mxu1 %v315_v3  ;;  %v307_v12 = vmax.f32 %v281_v6, 0.0 }
 0x124   :  { %v283_v9 = vpop.f32.mrf.mxu0  ;;  %636 = vmatmul.mubr.bf16.gmra.mxu1 %v316_v4 }
 0x125   :  { %v284_v10 = vadd.f32 %v521_v26, %v283_v9  ;;  %v310_v11 = vmax.f32 %v292_v7, 0.0 }
 0x127   :  { %v308_v13 = vmax.f32 %v284_v10, 0.0  ;;  %v318_v16 = vpack.c.bf16 %v310_v11, %v309_v14 }
 0x129   :  { %v317_v15 = vpack.c.bf16 %v308_v13, %v307_v12 }
 0x12b   :  { %639 = vmatprep.mubr.bf16.mxu1 %v317_v15 }
 0x12c   :  { %640 = vmatmul.mubr.bf16.gmra.mxu1 %v318_v16 }
 0x1d4   :  { %v629_v18 = vpop.f32.mrf.mxu1 }
 0x1d5   :  { %v433_v19 = vadd.f32 %v629_v18, %v538_v17 }
 0x1d6   :  { %v424_v20 = vpop.f32.mrf.mxu1 }
 0x1d7   :  { %489 = vst [vmem:[#allocation8 + $0x10] sm:$0xff] %v433_v19  ;;  %v425_v21 = vadd.f32 %v538_v17, %v424_v20 }
 0x1d8   :  { %v630_v22 = vpop.f32.mrf.mxu1 }
 0x1d9   :  { %487 = vst [vmem:[#allocation8] sm:$0xff] %v425_v21  ;;  %v436_v23 = vadd.f32 %v630_v22, %v538_v17 }
 0x1da   :  { %v427_v24 = vpop.f32.mrf.mxu1 }
 0x1db   :  { %490 = vst [vmem:[#allocation8 + $0x18] sm:$0xff] %v436_v23  ;;  %v428_v25 = vadd.f32 %v538_v17, %v427_v24 }
 0x1dc   :  { %v633_v26 = vpop.f32.mrf.mxu1 }
 0x1dd   :  { %488 = vst [vmem:[#allocation8 + $0x8] sm:$0xff] %v428_v25  ;;  %v449_v27 = vadd.f32 %v633_v26, %v538_v17 }
 0x1de   :  { %v440_v28 = vpop.f32.mrf.mxu1 }
 0x1df   :  { %493 = vst [vmem:[#allocation8 + $0x30] sm:$0xff] %v449_v27  ;;  %v441_v29 = vadd.f32 %v538_v17, %v440_v28 }
 0x1e0   :  { %v634_v30 = vpop.f32.mrf.mxu1 }
 0x1e1   :  { %491 = vst [vmem:[#allocation8 + $0x20] sm:$0xff] %v441_v29  ;;  %v452_v31 = vadd.f32 %v634_v30, %v538_v17 }
 0x1e2   :  { %v443_v32 = vpop.f32.mrf.mxu1 }
 0x1e3   :  { %494 = vst [vmem:[#allocation8 + $0x38] sm:$0xff] %v452_v31  ;;  %v444_v33 = vadd.f32 %v538_v17, %v443_v32 }
 0x1e4   :  { %v637_v34 = vpop.f32.mrf.mxu1 }
 0x1e5   :  { %492 = vst [vmem:[#allocation8 + $0x28] sm:$0xff] %v444_v33  ;;  %v465_v35 = vadd.f32 %v637_v34, %v538_v17 }
 0x1e6   :  { %v456_v36 = vpop.f32.mrf.mxu1 }
 0x1e7   :  { %497 = vst [vmem:[#allocation8 + $0x50] sm:$0xff] %v465_v35  ;;  %v457_v37 = vadd.f32 %v538_v17, %v456_v36 }
 0x1e8   :  { %v638_v38 = vpop.f32.mrf.mxu1 }
 0x1e9   :  { %495 = vst [vmem:[#allocation8 + $0x40] sm:$0xff] %v457_v37  ;;  %v468_v39 = vadd.f32 %v638_v38, %v538_v17 }
 0x1ea   :  { %v459_v40 = vpop.f32.mrf.mxu1 }
 0x1eb   :  { %498 = vst [vmem:[#allocation8 + $0x58] sm:$0xff] %v468_v39  ;;  %v460_v41 = vadd.f32 %v538_v17, %v459_v40 }
 0x1ec   :  { %v641_v42 = vpop.f32.mrf.mxu1 }
 0x1ed   :  { %496 = vst [vmem:[#allocation8 + $0x48] sm:$0xff] %v460_v41  ;;  %v481_v43 = vadd.f32 %v641_v42, %v538_v17 }
 0x1ee   :  { %v472_v44 = vpop.f32.mrf.mxu1 }
 0x1ef   :  { %501 = vst [vmem:[#allocation8 + $0x70] sm:$0xff] %v481_v43  ;;  %v473_v45 = vadd.f32 %v538_v17, %v472_v44 }
 0x1f0   :  { %v642_v46 = vpop.f32.mrf.mxu1 }
 0x1f1   :  { %499 = vst [vmem:[#allocation8 + $0x60] sm:$0xff] %v473_v45  ;;  %v484_v47 = vadd.f32 %v642_v46, %v538_v17 }
 0x1f2   :  { %v475_v48 = vpop.f32.mrf.mxu1 }
 0x1f3   :  { %502 = vst [vmem:[#allocation8 + $0x78] sm:$0xff] %v484_v47  ;;  %v476_v49 = vadd.f32 %v538_v17, %v475_v48 }
 0x1f5   :  { %500 = vst [vmem:[#allocation8 + $0x68] sm:$0xff] %v476_v49 }
 0x1f6   :  { %746 = shalt.err (!%p743_p5)
}
 0x1f7   :  { %s767_s12 = smov 128   ;;  %s768_s13 = smov 8  }
 0x1f8   :  { %514 = dma.vmem_to_hbm [thread:$0]  %s509_s10, 2048, %s822_s5, [#allocation4], %s767_s12, %s767_s12, %s768_s13  }
 0x1f9   :  { %759 = dma.done.wait [#allocation4], 2048  }
 0x1fa   :  { %760 = vsyncadd [#allocation4], 4294965248 }
 0x1fb   :  { %518 = vsyncpa [#allocation3], 1 }
 0x1fc   :  { %519 = vsyncpa [#allocation6], 1 }
 0x1fd   :  { %520 = vsyncpa [#allocation4], 1 }

</bundles_post_ra>
